<compile_context>
chip_gen: v5e
topology: v5e:2x2
jax: 0.10.0
libtpu: 0.0.40
codegen_flags: <defaults>
</compile_context>

<pallas_src>
import functools

import jax
import jax.numpy as jnp
from jax import lax
from jax.experimental import pallas as pl
from jax.experimental.pallas import tpu as pltpu


def _cdiv(a, b):
    return (a + b - 1) // b


def _dw_conv_kernel(x_ref, w_ref, b_ref, o_ref, xh_ref, *,
                    band_h, ksize, data_col, right_zero_col, right_zero_w):
    """Depthwise ksize x ksize conv (stride 1, SAME) on one NHWC channel block.

    x_ref : (1, H, W, CB)        unpadded input block (channels on lanes)
    w_ref : (k*k, CB)            per-channel taps, channels-last
    b_ref : (1, CB)              bias
    o_ref : (1, H, W, CB)        output block
    xh_ref: (H+2p, SW, CB)       zero-halo scratch; data lives at
                                 [p:p+H, data_col:data_col+W, :]
    """
    pad = ksize // 2
    H, W, CB = o_ref.shape[1], o_ref.shape[2], o_ref.shape[3]
    SW = xh_ref.shape[1]
    dt = xh_ref.dtype

    # ---- build zero halo in VMEM (all stores sublane-aligned) -------------
    # Re-done every grid step so it is correct under megacore sharding
    # (each core's private scratch is initialised on its own first step).
    xh_ref[:, 0:data_col, :] = jnp.zeros((H + 2 * pad, data_col, CB), dt)
    xh_ref[:, right_zero_col:right_zero_col + right_zero_w, :] = (
        jnp.zeros((H + 2 * pad, right_zero_w, CB), dt))
    xh_ref[0:pad, :, :] = jnp.zeros((pad, SW, CB), dt)
    xh_ref[pad + H:pad + H + pad, :, :] = jnp.zeros((pad, SW, CB), dt)
    # interior copy (column offset `data_col` is a multiple of 8 -> aligned;
    # overwrites any overlap with the right zero block)
    xh_ref[pad:pad + H, data_col:data_col + W, :] = x_ref[0]

    # ---- hoist weights / bias out of all loops (read once) ----------------
    w = w_ref[...].astype(jnp.float32)                        # (k*k, CB)
    bias = b_ref[...].astype(jnp.float32).reshape(1, 1, CB)   # (1, 1, CB)

    n_bands = H // band_h

    @pl.loop(0, n_bands)
    def _(i):
        r0 = pl.multiple_of(i * band_h, band_h)
        # One haloed band load; rows for each vertical tap are sliced from the
        # in-register value (free vreg selection) instead of re-loading.
        band = xh_ref[pl.ds(r0, band_h + 2 * pad), :, :].astype(jnp.float32)
        acc = bias                                            # bias-initialised
        for dh in range(ksize):                               # static, tiny
            rows = band[dh:dh + band_h]                       # (band_h, SW, CB)
            for dw in range(ksize):
                c0 = data_col - pad + dw
                win = rows[:, c0:c0 + W, :]                   # (band_h, W, CB)
                j = dh * ksize + dw
                tap = w[j:j + 1].reshape(1, 1, CB)            # python-int index
                acc = acc + win * tap
        o_ref[0, pl.ds(r0, band_h), :, :] = acc.astype(o_ref.dtype)


def repmixer_dwconv_nhwc(x_nhwc, w_dw, b_dw):
    """RepMixer (reparameterised) forward on a channels-last (NHWC) input.

    Computes nn.Conv2d(dim, dim, k, stride=1, padding=k//2, groups=dim) + bias.
    x_nhwc: (B, H, W, C);  w_dw: (C, 1, k, k) (PyTorch depthwise);  b_dw: (C,).
    """
    B, H, W, C = x_nhwc.shape
    Cw, one, kh, kw = w_dw.shape
    assert Cw == C and one == 1 and kh == kw
    k = kh
    pad = k // 2
    assert k % 2 == 1 and 1 <= pad <= 8 and H > pad

    # Channel blocking: lane-dense 128-channel blocks when possible.
    if C % 128 == 0:
        CB = 128
    else:
        CB = C  # single (lane-masked) block
        # TODO(synk): pad C to a multiple of 128 upstream for unmasked stores.
    n_cblk = C // CB

    # Weights: (C, 1, k, k) -> (k*k, C) so channels sit on lanes.
    w_kc = jnp.transpose(w_dw[:, 0], (1, 2, 0)).reshape(k * k, C)
    b_2d = b_dw.reshape(1, C)

    # Zero-halo scratch geometry (all column offsets sublane-aligned).
    data_col = 8                                   # left zero region (>= pad)
    rz_col = ((data_col + W) // 8) * 8             # aligned start of right zeros
    rz_w = 8
    while rz_col + rz_w < data_col + W + pad:
        rz_w += 8
    sw = rz_col + rz_w                             # scratch width

    # Band height: keep live vregs (haloed band + f32 accumulator) ~<= 52.
    lane_blocks = _cdiv(CB, 128)
    row_vregs = (_cdiv(sw, 8) + _cdiv(W, 8)) * lane_blocks
    halo_vregs = 2 * pad * _cdiv(sw, 8) * lane_blocks
    cap = max(1, (52 - halo_vregs) // row_vregs)
    band_h = 1
    for d in range(1, min(cap, H) + 1):
        if H % d == 0:
            band_h = d

    kernel = functools.partial(
        _dw_conv_kernel, band_h=band_h, ksize=k,
        data_col=data_col, right_zero_col=rz_col, right_zero_w=rz_w)

    # Explicit VMEM budget: 2x double-buffered in block + 2x out block +
    # halo scratch + params, with generous margin (clamped to safe limits).
    itemsize = jnp.dtype(x_nhwc.dtype).itemsize
    blk = H * W * CB * itemsize
    scratch_bytes = (H + 2 * pad) * sw * CB * itemsize
    need = 4 * blk + scratch_bytes + 4 * (k * k + 1) * CB * 4
    vmem_limit = int(min(32 * 2**20, max(16 * 2**20, 3 * need)))

    out = pl.pallas_call(
        kernel,
        out_shape=jax.ShapeDtypeStruct((B, H, W, C), x_nhwc.dtype),
        grid_spec=pltpu.PrefetchScalarGridSpec(
            num_scalar_prefetch=0,
            grid=(B, n_cblk),
            in_specs=[
                pl.BlockSpec((1, H, W, CB), lambda b, c: (b, 0, 0, c)),
                pl.BlockSpec((k * k, CB), lambda b, c: (0, c)),
                pl.BlockSpec((1, CB), lambda b, c: (0, c)),
            ],
            out_specs=pl.BlockSpec((1, H, W, CB), lambda b, c: (b, 0, 0, c)),
            scratch_shapes=[pltpu.VMEM((H + 2 * pad, sw, CB), x_nhwc.dtype)],
        ),
        compiler_params=pltpu.CompilerParams(
            dimension_semantics=("parallel", "parallel"),
            vmem_limit_bytes=vmem_limit),
    )(x_nhwc, w_kc, b_2d)
    return out


def repmixer_reparam_forward(x_nchw, w_dw, b_dw):
    """PyTorch-interface wrapper (NCHW in / NCHW out).

    The transposes are interface glue only; model-level code should keep
    activations NHWC end-to-end and call repmixer_dwconv_nhwc directly.
    """
    x_nhwc = jnp.transpose(x_nchw, (0, 2, 3, 1))
    y = repmixer_dwconv_nhwc(x_nhwc, w_dw, b_dw)
    return jnp.transpose(y, (0, 3, 1, 2))


def fold_repmixer_train_params(w_mixer, b_mixer, w_norm, b_norm, layer_scale=None):
    """Fold the training-mode forward  x + [ls*](mixer(x) - norm(x))  into a
    single depthwise conv — exactly RepMixer.reparameterize():
        use_layer_scale=True : W = Id + ls*(W_mixer - W_norm), b = ls*(b_mixer - b_norm)
        use_layer_scale=False: W = Id +    (W_mixer - W_norm), b =    (b_mixer - b_norm)
    w_mixer / w_norm are the effective (BN-folded, eval-mode) depthwise kernels
    of the mixer / norm MobileOneBlock branches, shape (C, 1, k, k).
    """
    # TODO(synk): MobileOneBlock internals (branch convs + BatchNorms) are not
    # part of the provided spec; their eval-mode folding into (w, b) pairs is
    # assumed done host-side before calling this helper.
    C, _, kh, kw = w_mixer.shape
    id_w = jnp.zeros_like(w_mixer).at[:, 0, kh // 2, kw // 2].set(1.0)
    if layer_scale is None:
        return id_w + (w_mixer - w_norm), (b_mixer - b_norm)
    ls = jnp.reshape(layer_scale, (C, 1, 1, 1))
    w = id_w + ls * (w_mixer - w_norm)
    b = jnp.reshape(layer_scale, (C,)) * (b_mixer - b_norm)
    return w, b


def _dwconv_ref(x_nchw, w_dw, b_dw):
    """Pure-JAX reference: nn.Conv2d(dim, dim, k, padding=k//2, groups=dim)."""
    C = x_nchw.shape[1]
    pad = w_dw.shape[-1] // 2
    y = lax.conv_general_dilated(
        x_nchw, w_dw, window_strides=(1, 1),
        padding=((pad, pad), (pad, pad)),
        dimension_numbers=("NCHW", "OIHW", "NCHW"),
        feature_group_count=C,
        precision=lax.Precision.HIGHEST)
    return y + b_dw[None, :, None, None]


if __name__ == "__main__":
    # Small shapes consistent with the module (dim=128 keeps stores lane-dense).
    B, C, H, W = 2, 128, 16, 16
    k = 3
    key = jax.random.PRNGKey(0)
    kx, kw1, kb1, kw2, kb2 = jax.random.split(key, 5)

    x = jax.random.normal(kx, (B, C, H, W), dtype=jnp.float32)

    # --- inference_mode=True path: reparam_conv (depthwise 3x3 + bias) ------
    w_rep = jax.random.normal(kw1, (C, 1, k, k), jnp.float32) * 0.2
    b_rep = jax.random.normal(kb1, (C,), jnp.float32) * 0.02

    out = jax.block_until_ready(repmixer_reparam_forward(x, w_rep, b_rep))
    ref = _dwconv_ref(x, w_rep, b_rep)
    assert out.shape == (B, C, H, W)
    assert jnp.allclose(out, ref, atol=1e-4, rtol=1e-4), "reparam path mismatch"

    # --- training path, use_layer_scale=True (branches pre-folded, eval BN) -
    w_mix = jax.random.normal(kw2, (C, 1, k, k), jnp.float32) * 0.2
    b_mix = jax.random.normal(kb2, (C,), jnp.float32) * 0.02
    w_nrm = jnp.zeros((C, 1, k, k), jnp.float32).at[:, 0, 1, 1].set(0.9)
    b_nrm = jnp.full((C,), 0.01, jnp.float32)
    layer_scale = jnp.full((C, 1, 1), 0.1, jnp.float32)

    w_f, b_f = fold_repmixer_train_params(w_mix, b_mix, w_nrm, b_nrm, layer_scale)
    out_t = jax.block_until_ready(repmixer_reparam_forward(x, w_f, b_f))
    ref_t = x + layer_scale[None] * (_dwconv_ref(x, w_mix, b_mix)
                                     - _dwconv_ref(x, w_nrm, b_nrm))
    assert jnp.allclose(out_t, ref_t, atol=1e-4, rtol=1e-4), "layer-scale path mismatch"

    # --- training path, use_layer_scale=False --------------------------------
    w_f0, b_f0 = fold_repmixer_train_params(w_mix, b_mix, w_nrm, b_nrm, None)
    out_0 = jax.block_until_ready(repmixer_reparam_forward(x, w_f0, b_f0))
    ref_0 = x + _dwconv_ref(x, w_mix, b_mix) - _dwconv_ref(x, w_nrm, b_nrm)
    assert jnp.allclose(out_0, ref_0, atol=1e-4, rtol=1e-4), "no-layer-scale path mismatch"

    print("KERNEL_OK")
</pallas_src>

<mosaic_0001>
module attributes {stable_mosaic.version = 11 : i64} {
  func.func @_dw_conv_kernel(%arg0: i32, %arg1: i32, %arg2: memref<1x16x16x128xf32, #tpu.memory_space<vmem>>, %arg3: memref<9x128xf32, #tpu.memory_space<vmem>>, %arg4: memref<1x128xf32, #tpu.memory_space<vmem>>, %arg5: memref<1x16x16x128xf32, #tpu.memory_space<vmem>>, %arg6: memref<18x32x128xf32, #tpu.memory_space<vmem>>) attributes {dimension_semantics = [#tpu.dimension_semantics<parallel>, #tpu.dimension_semantics<parallel>], iteration_bounds = array<i64: 2, 1>, scalar_prefetch = 0 : i64, scratch_operands = 1 : i64, tpu.core_type = #tpu.core_type<tc>, window_params = [{transform_indices = @transform_0, window_bounds = array<i64: 1, 16, 16, 128>}, {transform_indices = @transform_1, window_bounds = array<i64: 9, 128>}, {transform_indices = @transform_2, window_bounds = array<i64: 1, 128>}, {transform_indices = @transform_3, window_bounds = array<i64: 1, 16, 16, 128>}]} {
    %cst = arith.constant 0.000000e+00 : f32
    %0 = vector.broadcast %cst : f32 to vector<18x8x128xf32>
    %c0 = arith.constant 0 : index
    %c0_0 = arith.constant 0 : index
    %c0_1 = arith.constant 0 : index
    %1 = vector.load %arg6[%c0, %c0_0, %c0_1] : memref<18x32x128xf32, #tpu.memory_space<vmem>>, vector<18x8x128xf32>
    tpu.vector_store %arg6[%c0, %c0_0, %c0_1], %0 {strides = array<i32>} : memref<18x32x128xf32, #tpu.memory_space<vmem>>, vector<18x8x128xf32>,
    %cst_2 = arith.constant 0.000000e+00 : f32
    %2 = vector.broadcast %cst_2 : f32 to vector<18x8x128xf32>
    %c0_3 = arith.constant 0 : index
    %c24 = arith.constant 24 : index
    %c0_4 = arith.constant 0 : index
    %3 = vector.load %arg6[%c0_3, %c24, %c0_4] : memref<18x32x128xf32, #tpu.memory_space<vmem>>, vector<18x8x128xf32>
    tpu.vector_store %arg6[%c0_3, %c24, %c0_4], %2 {strides = array<i32>} : memref<18x32x128xf32, #tpu.memory_space<vmem>>, vector<18x8x128xf32>,
    %cst_5 = arith.constant 0.000000e+00 : f32
    %4 = vector.broadcast %cst_5 : f32 to vector<1x32x128xf32>
    %c0_6 = arith.constant 0 : index
    %c0_7 = arith.constant 0 : index
    %c0_8 = arith.constant 0 : index
    %5 = vector.load %arg6[%c0_6, %c0_7, %c0_8] : memref<18x32x128xf32, #tpu.memory_space<vmem>>, vector<1x32x128xf32>
    tpu.vector_store %arg6[%c0_6, %c0_7, %c0_8], %4 {strides = array<i32>} : memref<18x32x128xf32, #tpu.memory_space<vmem>>, vector<1x32x128xf32>,
    %cst_9 = arith.constant 0.000000e+00 : f32
    %6 = vector.broadcast %cst_9 : f32 to vector<1x32x128xf32>
    %c17 = arith.constant 17 : index
    %c0_10 = arith.constant 0 : index
    %c0_11 = arith.constant 0 : index
    %7 = vector.load %arg6[%c17, %c0_10, %c0_11] : memref<18x32x128xf32, #tpu.memory_space<vmem>>, vector<1x32x128xf32>
    tpu.vector_store %arg6[%c17, %c0_10, %c0_11], %6 {strides = array<i32>} : memref<18x32x128xf32, #tpu.memory_space<vmem>>, vector<1x32x128xf32>,
    %c0_12 = arith.constant 0 : index
    %c0_13 = arith.constant 0 : index
    %c0_14 = arith.constant 0 : index
    %c0_15 = arith.constant 0 : index
    %8 = vector.load %arg2[%c0_12, %c0_13, %c0_14, %c0_15] : memref<1x16x16x128xf32, #tpu.memory_space<vmem>>, vector<1x16x16x128xf32>
    %9 = vector.shape_cast %8 : vector<1x16x16x128xf32> to vector<16x16x128xf32>
    %c1 = arith.constant 1 : index
    %c8 = arith.constant 8 : index
    %c0_16 = arith.constant 0 : index
    %10 = vector.load %arg6[%c1, %c8, %c0_16] : memref<18x32x128xf32, #tpu.memory_space<vmem>>, vector<16x16x128xf32>
    tpu.vector_store %arg6[%c1, %c8, %c0_16], %9 {strides = array<i32>} : memref<18x32x128xf32, #tpu.memory_space<vmem>>, vector<16x16x128xf32>,
    %c0_17 = arith.constant 0 : index
    %c0_18 = arith.constant 0 : index
    %11 = vector.load %arg3[%c0_17, %c0_18] : memref<9x128xf32, #tpu.memory_space<vmem>>, vector<9x128xf32>
    %c0_19 = arith.constant 0 : index
    %c0_20 = arith.constant 0 : index
    %12 = vector.load %arg4[%c0_19, %c0_20] : memref<1x128xf32, #tpu.memory_space<vmem>>, vector<1x128xf32>
    %13 = vector.shape_cast %12 : vector<1x128xf32> to vector<1x1x128xf32>
    %c0_i32 = arith.constant 0 : i32
    %c4_i32 = arith.constant 4 : i32
    %14 = arith.addi %c0_i32, %c4_i32 : i32
    %c1_i32 = arith.constant 1 : i32
    scf.for %arg7 = %c0_i32 to %14 step %c1_i32  : i32 {
      %c1_i32_22 = arith.constant 1 : i32
      %15 = arith.muli %arg7, %c1_i32_22 : i32
      %c0_i32_23 = arith.constant 0 : i32
      %16 = arith.addi %c0_i32_23, %15 : i32
      %c4_i32_24 = arith.constant 4 : i32
      %17 = arith.muli %16, %c4_i32_24 : i32
      %18 = tpu.assume_multiple %17, 4 : i32
      %19 = arith.index_cast %18 : i32 to index
      %c0_25 = arith.constant 0 : index
      %c0_26 = arith.constant 0 : index
      %20 = vector.load %arg6[%19, %c0_25, %c0_26] : memref<18x32x128xf32, #tpu.memory_space<vmem>>, vector<6x32x128xf32>
      %21 = vector.extract_strided_slice %20 {offsets = [0, 0, 0], sizes = [4, 32, 128], strides = [1, 1, 1]} : vector<6x32x128xf32> to vector<4x32x128xf32>
      %22 = vector.extract_strided_slice %21 {offsets = [0, 7, 0], sizes = [4, 16, 128], strides = [1, 1, 1]} : vector<4x32x128xf32> to vector<4x16x128xf32>
      %23 = vector.extract_strided_slice %11 {offsets = [0, 0], sizes = [1, 128], strides = [1, 1]} : vector<9x128xf32> to vector<1x128xf32>
      %24 = vector.shape_cast %23 : vector<1x128xf32> to vector<1x1x128xf32>
      %25 = vector.broadcast %24 : vector<1x1x128xf32> to vector<4x16x128xf32>
      %26 = arith.mulf %22, %25 : vector<4x16x128xf32>
      %27 = vector.broadcast %13 : vector<1x1x128xf32> to vector<4x16x128xf32>
      %28 = arith.addf %27, %26 : vector<4x16x128xf32>
      %29 = vector.extract_strided_slice %21 {offsets = [0, 8, 0], sizes = [4, 16, 128], strides = [1, 1, 1]} : vector<4x32x128xf32> to vector<4x16x128xf32>
      %30 = vector.extract_strided_slice %11 {offsets = [1, 0], sizes = [1, 128], strides = [1, 1]} : vector<9x128xf32> to vector<1x128xf32>
      %31 = vector.shape_cast %30 : vector<1x128xf32> to vector<1x1x128xf32>
      %32 = vector.broadcast %31 : vector<1x1x128xf32> to vector<4x16x128xf32>
      %33 = arith.mulf %29, %32 : vector<4x16x128xf32>
      %34 = arith.addf %28, %33 : vector<4x16x128xf32>
      %35 = vector.extract_strided_slice %21 {offsets = [0, 9, 0], sizes = [4, 16, 128], strides = [1, 1, 1]} : vector<4x32x128xf32> to vector<4x16x128xf32>
      %36 = vector.extract_strided_slice %11 {offsets = [2, 0], sizes = [1, 128], strides = [1, 1]} : vector<9x128xf32> to vector<1x128xf32>
      %37 = vector.shape_cast %36 : vector<1x128xf32> to vector<1x1x128xf32>
      %38 = vector.broadcast %37 : vector<1x1x128xf32> to vector<4x16x128xf32>
      %39 = arith.mulf %35, %38 : vector<4x16x128xf32>
      %40 = arith.addf %34, %39 : vector<4x16x128xf32>
      %41 = vector.extract_strided_slice %20 {offsets = [1, 0, 0], sizes = [4, 32, 128], strides = [1, 1, 1]} : vector<6x32x128xf32> to vector<4x32x128xf32>
      %42 = vector.extract_strided_slice %41 {offsets = [0, 7, 0], sizes = [4, 16, 128], strides = [1, 1, 1]} : vector<4x32x128xf32> to vector<4x16x128xf32>
      %43 = vector.extract_strided_slice %11 {offsets = [3, 0], sizes = [1, 128], strides = [1, 1]} : vector<9x128xf32> to vector<1x128xf32>
      %44 = vector.shape_cast %43 : vector<1x128xf32> to vector<1x1x128xf32>
      %45 = vector.broadcast %44 : vector<1x1x128xf32> to vector<4x16x128xf32>
      %46 = arith.mulf %42, %45 : vector<4x16x128xf32>
      %47 = arith.addf %40, %46 : vector<4x16x128xf32>
      %48 = vector.extract_strided_slice %41 {offsets = [0, 8, 0], sizes = [4, 16, 128], strides = [1, 1, 1]} : vector<4x32x128xf32> to vector<4x16x128xf32>
      %49 = vector.extract_strided_slice %11 {offsets = [4, 0], sizes = [1, 128], strides = [1, 1]} : vector<9x128xf32> to vector<1x128xf32>
      %50 = vector.shape_cast %49 : vector<1x128xf32> to vector<1x1x128xf32>
      %51 = vector.broadcast %50 : vector<1x1x128xf32> to vector<4x16x128xf32>
      %52 = arith.mulf %48, %51 : vector<4x16x128xf32>
      %53 = arith.addf %47, %52 : vector<4x16x128xf32>
      %54 = vector.extract_strided_slice %41 {offsets = [0, 9, 0], sizes = [4, 16, 128], strides = [1, 1, 1]} : vector<4x32x128xf32> to vector<4x16x128xf32>
      %55 = vector.extract_strided_slice %11 {offsets = [5, 0], sizes = [1, 128], strides = [1, 1]} : vector<9x128xf32> to vector<1x128xf32>
      %56 = vector.shape_cast %55 : vector<1x128xf32> to vector<1x1x128xf32>
      %57 = vector.broadcast %56 : vector<1x1x128xf32> to vector<4x16x128xf32>
      %58 = arith.mulf %54, %57 : vector<4x16x128xf32>
      %59 = arith.addf %53, %58 : vector<4x16x128xf32>
      %60 = vector.extract_strided_slice %20 {offsets = [2, 0, 0], sizes = [4, 32, 128], strides = [1, 1, 1]} : vector<6x32x128xf32> to vector<4x32x128xf32>
      %61 = vector.extract_strided_slice %60 {offsets = [0, 7, 0], sizes = [4, 16, 128], strides = [1, 1, 1]} : vector<4x32x128xf32> to vector<4x16x128xf32>
      %62 = vector.extract_strided_slice %11 {offsets = [6, 0], sizes = [1, 128], strides = [1, 1]} : vector<9x128xf32> to vector<1x128xf32>
      %63 = vector.shape_cast %62 : vector<1x128xf32> to vector<1x1x128xf32>
      %64 = vector.broadcast %63 : vector<1x1x128xf32> to vector<4x16x128xf32>
      %65 = arith.mulf %61, %64 : vector<4x16x128xf32>
      %66 = arith.addf %59, %65 : vector<4x16x128xf32>
      %67 = vector.extract_strided_slice %60 {offsets = [0, 8, 0], sizes = [4, 16, 128], strides = [1, 1, 1]} : vector<4x32x128xf32> to vector<4x16x128xf32>
      %68 = vector.extract_strided_slice %11 {offsets = [7, 0], sizes = [1, 128], strides = [1, 1]} : vector<9x128xf32> to vector<1x128xf32>
      %69 = vector.shape_cast %68 : vector<1x128xf32> to vector<1x1x128xf32>
      %70 = vector.broadcast %69 : vector<1x1x128xf32> to vector<4x16x128xf32>
      %71 = arith.mulf %67, %70 : vector<4x16x128xf32>
      %72 = arith.addf %66, %71 : vector<4x16x128xf32>
      %73 = vector.extract_strided_slice %60 {offsets = [0, 9, 0], sizes = [4, 16, 128], strides = [1, 1, 1]} : vector<4x32x128xf32> to vector<4x16x128xf32>
      %74 = vector.extract_strided_slice %11 {offsets = [8, 0], sizes = [1, 128], strides = [1, 1]} : vector<9x128xf32> to vector<1x128xf32>
      %75 = vector.shape_cast %74 : vector<1x128xf32> to vector<1x1x128xf32>
      %76 = vector.broadcast %75 : vector<1x1x128xf32> to vector<4x16x128xf32>
      %77 = arith.mulf %73, %76 : vector<4x16x128xf32>
      %78 = arith.addf %72, %77 : vector<4x16x128xf32>
      %c0_27 = arith.constant 0 : index
      %79 = arith.index_cast %18 : i32 to index
      %c0_28 = arith.constant 0 : index
      %c0_29 = arith.constant 0 : index
      %80 = vector.load %arg5[%c0_27, %79, %c0_28, %c0_29] : memref<1x16x16x128xf32, #tpu.memory_space<vmem>>, vector<1x4x16x128xf32>
      %81 = vector.shape_cast %80 : vector<1x4x16x128xf32> to vector<4x16x128xf32>
      %82 = vector.shape_cast %78 : vector<4x16x128xf32> to vector<1x4x16x128xf32>
      tpu.vector_store %arg5[%c0_27, %79, %c0_28, %c0_29], %82 {strides = array<i32>} : memref<1x16x16x128xf32, #tpu.memory_space<vmem>>, vector<1x4x16x128xf32>,
    }
    %c4_i32_21 = arith.constant 4 : i32
    return
  }
  func.func @transform_0(%arg0: i32, %arg1: i32) -> (i32, i32, i32, i32) {
    %c0_i32 = arith.constant 0 : i32
    %c0_i32_0 = arith.constant 0 : i32
    %c0_i32_1 = arith.constant 0 : i32
    return %arg0, %c0_i32, %c0_i32_0, %arg1 : i32, i32, i32, i32
  }
  func.func @transform_1(%arg0: i32, %arg1: i32) -> (i32, i32) {
    %c0_i32 = arith.constant 0 : i32
    %c0_i32_0 = arith.constant 0 : i32
    return %c0_i32, %arg1 : i32, i32
  }
  func.func @transform_2(%arg0: i32, %arg1: i32) -> (i32, i32) {
    %c0_i32 = arith.constant 0 : i32
    %c0_i32_0 = arith.constant 0 : i32
    return %c0_i32, %arg1 : i32, i32
  }
  func.func @transform_3(%arg0: i32, %arg1: i32) -> (i32, i32, i32, i32) {
    %c0_i32 = arith.constant 0 : i32
    %c0_i32_0 = arith.constant 0 : i32
    %c0_i32_1 = arith.constant 0 : i32
    return %arg0, %c0_i32, %c0_i32_0, %arg1 : i32, i32, i32, i32
  }
}

</mosaic_0001>

<bundles_post_ra>
// kernel: tpu_custom_call.1
= control target key start
LH: loop header
LB: loop body
LE: loop exit
PB: predicated region body
PF: predicated region fallthrough
CT: control target
= control target key end

     0   :  { %s1851_s0 = inlined_call_operand.hbm [shape: f32[2,16,16,128], index: 0, kind: input, shape index: {}]   ;;  %s1852_s1 = inlined_call_operand.hbm [shape: f32[9,128], index: 1, kind: input, shape index: {}]   ;;  %s1853_s2 = inlined_call_operand.vmem [shape: f32[1,128], index: 2, kind: input, shape index: {}]   ;;  %s1854_s3 = inlined_call_operand.hbm [shape: f32[2,16,16,128], index: 3, kind: output, shape index: {}]  }
   0x1   :  { %1856 = sst [smem:[#allocation12_spill]] %s1852_s1 }
   0x2   :  { %8 = vsyncpa [#allocation4], 0 }
   0x3   :  { %10 = vsyncpa [#allocation4 + $0x1], 0 }
   0x4   :  { %11 = vsyncpa [#allocation7], 0 }
   0x5   :  { %12 = vsyncpa [#allocation5], 0 }
   0x6   :  { %14 = vsyncpa [#allocation5 + $0x1], 0  ;;  %s1280_s12 = smov 0   ;;  %s1282_s13 = smov 0  }
   0x7   :  { %s1284_s14 = smov 0   ;;  %s1286_s15 = smov 0  }
   0x8   :  { %s1288_s16 = smov 0   ;;  %s1290_s17 = smov 0  }
   0x9 LB: > { %s987_s18 = sadd.s32 4294967295, %s1248_s17   ;;  %s988_s19 = sadd.s32 4294967294, %s1248_s17   ;;  %s1248_s17 = sphi %s1290_s17, %s20_s17   ;;  %s1244_s16 = sphi %s1288_s16, %s1870_s16   ;;  %s1240_s15 = sphi %s1286_s15, %s1869_s15   ;;  %s1236_s14 = sphi %s1284_s14, %s1868_s14   ;;  %s1232_s13 = sphi %s1282_s13, %s1867_s13   ;;  %s1228_s12 = sphi %s1280_s12, %s1866_s12  }
   0xa   : > { %p54_p0 = scmp.ne.s32.totalorder %s1232_s13, %s1228_s12  ;;  %p1314_p1 = scmp.eq.s32.totalorder %s987_s18, 0 }
   0xb   : > { %p1318_p2 = scmp.eq.s32.totalorder %s987_s18, 1  ;;  %p138_p3 = scmp.eq.s32.totalorder %s988_s19, 1 }
   0xc   : > { %p1324_p4 = por %p1314_p1, %p54_p0  ;;  %p989_p5 = scmp.ge.s32.totalorder %s1248_s17, 1 }
   0xd   : > { %p1329_p6 = por %p138_p3, %p54_p0  ;;  %p145_p7 = scmp.lt.s32.totalorder %s1248_s17, 3 }
   0xe   : > { %s1861_s1 = sld [smem:[#allocation12_spill]]  ;;  %s1254_s28 = smov [#allocation6]  }
   0xf   : > { %p1337_p8 = pnand %p989_p5, %p145_p7  ;;  %s160_s29 = sshll.u32 %s1254_s28, 4  ;;  %s161_s29 = int_to_ptr.vmem [resolvable:$true] %s160_s29 }
  0x10   : > { %p992_p11 = scmp.ge.s32.totalorder %s1248_s17, 2  ;;  %s1855_s30 = smov 128  }
  0x11   : > { %p1020_p9 = pneg %p1337_p8  ;;  %s1256_s4 = smov 8  }
  0x12   : > { %s32_s5 = sadd.s32 1, %s1244_s16  ;;  %s41_s6 = sadd.s32 1, %s1236_s14 }
  0x13   : > { %p1021_p10 = pnand %p1020_p9, %p1314_p1  ;;  %p34_p12 = scmp.ge.s32.totalorder %s32_s5, 2 }
  0x14   : > { %s158_s26 = sshll.u32 %s1861_s1, 4  ;;  %p48_p13 = scmp.ne.s32.totalorder %s1236_s14, %s1232_s13  ;;  %s159_s26 = int_to_ptr.hbm [resolvable:$true] %s158_s26 }
  0x15   : > { %1023 = dma.hbm_to_vmem [thread:$0]  (!%p1021_p10), %s159_s26, 256, %s161_s29, [#allocation7], %s1855_s30, %s1855_s30, %s1256_s4  }
  0x16   : > { %p49_p0 = scmp.eq.s32.totalorder %s1248_s17, 0  ;;  %s1872_s5 = smov (%p34_p12, %s32_s5), 0 }
  0x17   : > { %p1362_p5 = por %p1318_p2, %p48_p13  ;;  %s36_s9 = ssub.s32 %s1244_s16, %s1872_s5 }
  0x18   : > { %p1356_p3 = por %p49_p0, %p48_p13  ;;  %p1033_p7 = scmp.lt.s32.totalorder %s1248_s17, 2 }
  0x19   : > { %p39_p9 = scmp.eq.s32.totalorder %s36_s9, 0  ;;  %s180_s10 = sand.u32 1, %s1236_s14  }
  0x1a   : > { %s993_s11 = sshll.u32 %s180_s10, 8  ;;  %s1008_s19 = sshll.u32 %s1244_s16, 8 }
  0x1b   : > { %s1371_s18 = scalar_select %p39_p9, %s1236_s14, %s41_s6  }
  0x1c   : > { %s190_s26 = scalar_lea.hbm %s1851_s0, %s1008_s19  ;;  %s184_s28 = scalar_lea.vmem [#allocation3], %s993_s11 }
  0x1d   : > { %s193_s29 = sshll.u32 %s184_s28, 4  ;;  %s191_s21 = sshll.u32 %s190_s26, 4  ;;  %s194_s29 = int_to_ptr.vmem [resolvable:$true] %s193_s29  ;;  %s192_s21 = int_to_ptr.hbm [resolvable:$true] %s191_s21 }
  0x1e   : > { %p1025_p2 = pnand %p1033_p7, %p1356_p3  ;;  %s181_s30 = scalar_lea.sflag [#allocation4], %s180_s10 }
  0x1f   : > { %s1865_s1 = smov 128   ;;  %205 = sbr.rel (%p1337_p8) target bundleno = 208 (0xd0), region = 32 }
  0x20   : > { %1027 = dma.hbm_to_vmem [thread:$0]  (!%p1025_p2), %s192_s21, 4096, %s194_s29, %s181_s30, %s1865_s1, %s1865_s1, %s1256_s4  }
  0x21   : > { %s1385_s6 = sand.u32 (!%p1337_p8), 1, %s1232_s13  }
  0x22   : > { %s997_s9 = sshll.u32 (!%p1337_p8), %s1385_s6, 8  ;;  %s208_s11 = scalar_lea.sflag (!%p1337_p8), [#allocation4], %s1385_s6 }
  0x23   : > { %s1391_s7 = scalar_lea.vmem (!%p1337_p8), [#allocation3], %s997_s9 }
  0x24   : > { %1215 = dma.done.wait (%p1324_p4), %s208_s11, 4096  }
  0x25   : > { %1217 = vsyncadd (%p1324_p4), %s208_s11, 4294963200 }
  0x26   : > { %1219 = dma.done.wait (%p1314_p1), [#allocation7], 256  }
  0x27   : > { %1221 = vsyncadd (%p1314_p1), [#allocation7], 4294967040  ;;  %v1257_v0 = vmov 0.0   ;;  %v1401_v1 = vld [vmem:[#allocation6] sm:$0xff]  ;;  %v1403_v2 = vld [vmem:[#allocation6 + $0x8] sm:$0x1] }
  0x28   : > { %247 = vst [vmem:[#allocation2 + $0x20] sm:$0xff] %v1257_v0  ;;  %v1408_v3 = vld [vmem:[%s1853_s2] sm:$0x1]  ;;  %v292_v5 = vld [vmem:[%s1391_s7 + $0x8] sm:$0xff]  ;;  %v293_v6 = vld [vmem:[%s1391_s7 + $0x10] sm:$0xff]  ;;  %s1444_s20 = scalar_lea.vmem [#allocation8], %s997_s9 }
  0x29   : > { %248 = vst [vmem:[#allocation2 + $0x40] sm:$0xff] %v1257_v0  ;;  %v291_v4 = vld [vmem:[%s1391_s7] sm:$0xff]  ;;  %v294_v7 = vld [vmem:[%s1391_s7 + $0x18] sm:$0xff]  ;;  %v296_v9 = vld [vmem:[%s1391_s7 + $0x28] sm:$0xff]  ;;  %s1446_s27 = smov 0  }
  0x2a   : > { %249 = vst [vmem:[#allocation2 + $0x60] sm:$0xff] %v1257_v0  ;;  %v295_v8 = vld [vmem:[%s1391_s7 + $0x20] sm:$0xff]  ;;  %v297_v10 = vld [vmem:[%s1391_s7 + $0x30] sm:$0xff]  ;;  %v298_v11 = vld [vmem:[%s1391_s7 + $0x38] sm:$0xff] }
  0x2b   : > { %250 = vst [vmem:[#allocation2 + $0x80] sm:$0xff] %v1257_v0  ;;  %v299_v12 = vld [vmem:[%s1391_s7 + $0x40] sm:$0xff]  ;;  %v300_v13 = vld [vmem:[%s1391_s7 + $0x48] sm:$0xff]  ;;  %v301_v14 = vld [vmem:[%s1391_s7 + $0x50] sm:$0xff] }
  0x2c   : > { %251 = vst [vmem:[#allocation2 + $0xa0] sm:$0xff] %v1257_v0  ;;  %v302_v15 = vld [vmem:[%s1391_s7 + $0x58] sm:$0xff]  ;;  %v303_v16 = vld [vmem:[%s1391_s7 + $0x60] sm:$0xff]  ;;  %v304_v17 = vld [vmem:[%s1391_s7 + $0x68] sm:$0xff] }
  0x2d   : > { %252 = vst [vmem:[#allocation2 + $0xc0] sm:$0xff] %v1257_v0  ;;  %v305_v18 = vld [vmem:[%s1391_s7 + $0x70] sm:$0xff]  ;;  %v306_v19 = vld [vmem:[%s1391_s7 + $0x78] sm:$0xff]  ;;  %v307_v20 = vld [vmem:[%s1391_s7 + $0x80] sm:$0xff] }
  0x2e   : > { %253 = vst [vmem:[#allocation2 + $0xe0] sm:$0xff] %v1257_v0  ;;  %v308_v21 = vld [vmem:[%s1391_s7 + $0x88] sm:$0xff]  ;;  %v309_v22 = vld [vmem:[%s1391_s7 + $0x90] sm:$0xff]  ;;  %v310_v23 = vld [vmem:[%s1391_s7 + $0x98] sm:$0xff] }
  0x2f   : > { %254 = vst [vmem:[#allocation2 + $0x100] sm:$0xff] %v1257_v0  ;;  %v311_v24 = vld [vmem:[%s1391_s7 + $0xa0] sm:$0xff]  ;;  %v312_v25 = vld [vmem:[%s1391_s7 + $0xa8] sm:$0xff]  ;;  %v313_v26 = vld [vmem:[%s1391_s7 + $0xb0] sm:$0xff] }
  0x30   : > { %255 = vst [vmem:[#allocation2 + $0x120] sm:$0xff] %v1257_v0  ;;  %v314_v27 = vld [vmem:[%s1391_s7 + $0xb8] sm:$0xff]  ;;  %v315_v28 = vld [vmem:[%s1391_s7 + $0xc0] sm:$0xff]  ;;  %v316_v29 = vld [vmem:[%s1391_s7 + $0xc8] sm:$0xff] }
  0x31   : > { %256 = vst [vmem:[#allocation2 + $0x140] sm:$0xff] %v1257_v0  ;;  %v317_v30 = vld [vmem:[%s1391_s7 + $0xd0] sm:$0xff]  ;;  %v318_v31 = vld [vmem:[%s1391_s7 + $0xd8] sm:$0xff]  ;;  %v319_v32 = vld [vmem:[%s1391_s7 + $0xe0] sm:$0xff] }
  0x32   : > { %257 = vst [vmem:[#allocation2 + $0x160] sm:$0xff] %v1257_v0  ;;  %v320_v33 = vld [vmem:[%s1391_s7 + $0xe8] sm:$0xff]  ;;  %v321_v34 = vld [vmem:[%s1391_s7 + $0xf0] sm:$0xff]  ;;  %v322_v35 = vld [vmem:[%s1391_s7 + $0xf8] sm:$0xff] }
  0x33   : > { %258 = vst [vmem:[#allocation2 + $0x180] sm:$0xff] %v1257_v0 }
  0x34   : > { %259 = vst [vmem:[#allocation2 + $0x1a0] sm:$0xff] %v1257_v0 }
  0x35   : > { %260 = vst [vmem:[#allocation2 + $0x1c0] sm:$0xff] %v1257_v0 }
  0x36   : > { %261 = vst [vmem:[#allocation2 + $0x1e0] sm:$0xff] %v1257_v0 }
  0x37   : > { %262 = vst [vmem:[#allocation2 + $0x200] sm:$0xff] %v1257_v0 }
  0x38   : > { %265 = vst [vmem:[#allocation2 + $0x38] sm:$0xff] %v1257_v0 }
  0x39   : > { %266 = vst [vmem:[#allocation2 + $0x58] sm:$0xff] %v1257_v0 }
  0x3a   : > { %267 = vst [vmem:[#allocation2 + $0x78] sm:$0xff] %v1257_v0 }
  0x3b   : > { %268 = vst [vmem:[#allocation2 + $0x98] sm:$0xff] %v1257_v0 }
  0x3c   : > { %269 = vst [vmem:[#allocation2 + $0xb8] sm:$0xff] %v1257_v0 }
  0x3d   : > { %270 = vst [vmem:[#allocation2 + $0xd8] sm:$0xff] %v1257_v0 }
  0x3e   : > { %271 = vst [vmem:[#allocation2 + $0xf8] sm:$0xff] %v1257_v0 }
  0x3f   : > { %272 = vst [vmem:[#allocation2 + $0x118] sm:$0xff] %v1257_v0 }
  0x40   : > { %273 = vst [vmem:[#allocation2 + $0x138] sm:$0xff] %v1257_v0 }
  0x41   : > { %274 = vst [vmem:[#allocation2 + $0x158] sm:$0xff] %v1257_v0 }
  0x42   : > { %275 = vst [vmem:[#allocation2 + $0x178] sm:$0xff] %v1257_v0 }
  0x43   : > { %276 = vst [vmem:[#allocation2 + $0x198] sm:$0xff] %v1257_v0 }
  0x44   : > { %277 = vst [vmem:[#allocation2 + $0x1b8] sm:$0xff] %v1257_v0 }
  0x45   : > { %278 = vst [vmem:[#allocation2 + $0x1d8] sm:$0xff] %v1257_v0 }
  0x46   : > { %279 = vst [vmem:[#allocation2 + $0x1f8] sm:$0xff] %v1257_v0 }
  0x47   : > { %280 = vst [vmem:[#allocation2 + $0x218] sm:$0xff] %v1257_v0 }
  0x48   : > { %282 = vst [vmem:[#allocation2] sm:$0xff] %v1257_v0 }
  0x49   : > { %283 = vst [vmem:[#allocation2 + $0x8] sm:$0xff] %v1257_v0 }
  0x4a   : > { %284 = vst [vmem:[#allocation2 + $0x10] sm:$0xff] %v1257_v0 }
  0x4b   : > { %288 = vst [vmem:[#allocation2 + $0x228] sm:$0xff] %v1257_v0 }
  0x4c   : > { %289 = vst [vmem:[#allocation2 + $0x230] sm:$0xff] %v1257_v0 }
  0x4d   : > { %285 = vst [vmem:[#allocation2 + $0x18] sm:$0xff] %v1257_v0 }
  0x4e   : > { %287 = vst [vmem:[#allocation2 + $0x220] sm:$0xff] %v1257_v0 }
  0x4f   : > { %290 = vst [vmem:[#allocation2 + $0x238] sm:$0xff] %v1257_v0 }
  0x50   : > { %324 = vst [vmem:[#allocation2 + $0x28] sm:$0xff] %v291_v4 }
  0x51   : > { %325 = vst [vmem:[#allocation2 + $0x30] sm:$0xff] %v292_v5 }
  0x52   : > { %326 = vst [vmem:[#allocation2 + $0x48] sm:$0xff] %v293_v6 }
  0x53   : > { %327 = vst [vmem:[#allocation2 + $0x50] sm:$0xff] %v294_v7 }
  0x54   : > { %328 = vst [vmem:[#allocation2 + $0x68] sm:$0xff] %v295_v8 }
  0x55   : > { %329 = vst [vmem:[#allocation2 + $0x70] sm:$0xff] %v296_v9 }
  0x56   : > { %330 = vst [vmem:[#allocation2 + $0x88] sm:$0xff] %v297_v10 }
  0x57   : > { %331 = vst [vmem:[#allocation2 + $0x90] sm:$0xff] %v298_v11 }
  0x58   : > { %332 = vst [vmem:[#allocation2 + $0xa8] sm:$0xff] %v299_v12 }
  0x59   : > { %333 = vst [vmem:[#allocation2 + $0xb0] sm:$0xff] %v300_v13 }
  0x5a   : > { %334 = vst [vmem:[#allocation2 + $0xc8] sm:$0xff] %v301_v14 }
  0x5b   : > { %335 = vst [vmem:[#allocation2 + $0xd0] sm:$0xff] %v302_v15 }
  0x5c   : > { %336 = vst [vmem:[#allocation2 + $0xe8] sm:$0xff] %v303_v16 }
  0x5d   : > { %337 = vst [vmem:[#allocation2 + $0xf0] sm:$0xff] %v304_v17 }
  0x5e   : > { %338 = vst [vmem:[#allocation2 + $0x108] sm:$0xff] %v305_v18 }
  0x5f   : > { %339 = vst [vmem:[#allocation2 + $0x110] sm:$0xff] %v306_v19 }
  0x60   : > { %340 = vst [vmem:[#allocation2 + $0x128] sm:$0xff] %v307_v20 }
  0x61   : > { %341 = vst [vmem:[#allocation2 + $0x130] sm:$0xff] %v308_v21 }
  0x62   : > { %342 = vst [vmem:[#allocation2 + $0x148] sm:$0xff] %v309_v22 }
  0x63   : > { %343 = vst [vmem:[#allocation2 + $0x150] sm:$0xff] %v310_v23 }
  0x64   : > { %344 = vst [vmem:[#allocation2 + $0x168] sm:$0xff] %v311_v24 }
  0x65   : > { %345 = vst [vmem:[#allocation2 + $0x170] sm:$0xff] %v312_v25 }
  0x66   : > { %346 = vst [vmem:[#allocation2 + $0x188] sm:$0xff] %v313_v26 }
  0x67   : > { %347 = vst [vmem:[#allocation2 + $0x190] sm:$0xff] %v314_v27 }
  0x68   : > { %348 = vst [vmem:[#allocation2 + $0x1a8] sm:$0xff] %v315_v28 }
  0x69   : > { %349 = vst [vmem:[#allocation2 + $0x1b0] sm:$0xff] %v316_v29 }
  0x6a   : > { %350 = vst [vmem:[#allocation2 + $0x1c8] sm:$0xff] %v317_v30 }
  0x6b   : > { %351 = vst [vmem:[#allocation2 + $0x1d0] sm:$0xff] %v318_v31 }
  0x6c   : > { %352 = vst [vmem:[#allocation2 + $0x1e8] sm:$0xff] %v319_v32 }
  0x6d   : > { %353 = vst [vmem:[#allocation2 + $0x1f0] sm:$0xff] %v320_v33 }
  0x6e   : > { %354 = vst [vmem:[#allocation2 + $0x208] sm:$0xff] %v321_v34 }
  0x6f   : > { %355 = vst [vmem:[#allocation2 + $0x210] sm:$0xff] %v322_v35 }
  0x70 LB: >> { %v1452_v36 = vperm.slane %v1401_v1, 0  ;;  %v1455_v37 = vperm.slane %v1401_v1, 1  ;;  %v1458_v38 = vperm.slane %v1401_v1, 2  ;;  %s1009_s30 = sshll.u32 %s1252_s27, 7  ;;  %v1462_v39 = vperm.slane %v1401_v1, 4  ;;  %s1010_s10 = sshll.u32 %s1252_s27, 6  ;;  %s1252_s27 = sphi %s1446_s27, %s364_s27  }
  0x71   : >> { %v1465_v40 = vperm.slane %v1408_v3, 0  ;;  %s1467_s4 = scalar_lea.vmem [#allocation2], %s1009_s30  ;;  %v1472_v43 = vperm.slane %v1401_v1, 3  ;;  %v1475_v44 = vperm.slane %v1401_v1, 5  ;;  %v1478_v45 = vperm.slane %v1401_v1, 6  ;;  %s1576_s19 = scalar_lea.vmem %s1444_s20, %s1010_s10 [#allocation8] }
  0x72   : >> { %v1489_v52 = vperm.slane %v1401_v1, 7  ;;  %v1495_v55 = vperm.slane %v1403_v2, 0  ;;  %vm437_vm0 = vcmask 1046528   ;;  %vm499_vm1 = vcmask 1045504   ;;  %s364_s27 = sadd.s32 1, %s1252_s27  }
  0x73   : >> { %p361_p1 = scmp.ge.s32.totalorder %s364_s27, 4  }
  0x74   : > { %s1011_s24 = sshll.u32 (%p361_p1), %s1240_s15, 8  ;;  %s866_s29 = sshll.u32 (%p361_p1), %s1444_s20, 4  ;;  %s867_s29 = int_to_ptr.vmem [resolvable:$true] %s866_s29 }
  0x75   : > { %s865_s28 = scalar_lea.hbm (%p361_p1), %s1854_s3, %s1011_s24  ;;  %s853_s9 = scalar_lea.sflag (%p361_p1), [#allocation5], %s1385_s6 }
  0x76   : >> { %v368_v41 = vld [vmem:[%s1467_s4] sm:$0xff]  ;;  %v369_v42 = vld [vmem:[%s1467_s4 + $0x8] sm:$0xff]  ;;  %v370_v59 = vld [vmem:[%s1467_s4 + $0x10] sm:$0xff]  ;;  %s868_s21 = sshll.u32 (%p361_p1), %s865_s28, 4  ;;  %s1178_s15 = scalar_lea.hbm (%p361_p1), %s1854_s3, 512  ;;  %s869_s21 = int_to_ptr.hbm [resolvable:$true] %s868_s21 }
  0x77   : >> { %v372_v46 = vld [vmem:[%s1467_s4 + $0x20] sm:$0xff]  ;;  %v1482_v47 = vld [vmem:[%s1467_s4 + $0x28] sm:$0xff]  ;;  %v393_v49 = vmul.f32 %v1452_v36, %v368_v41  ;;  %v421_v50 = vmul.f32 %v1455_v37, %v369_v42  ;;  %v475_v51 = vmul.f32 %v1458_v38, %v369_v42  ;;  %v394_v7 = vmul.f32 %v1452_v36, %v369_v42  ;;  %v1519_v10 = vld [vmem:[%s1467_s4 + $0x30] sm:$0xff]  ;;  %s1172_s11 = sshra.s32 (%p361_p1), %s869_s21, 4  ;;  %s1173_s11 = int_to_ptr.hbm [resolvable:$true] %s1172_s11 }
  0x78   : >> { %v376_v48 = vld [vmem:[%s1467_s4 + $0x40] sm:$0xff]  ;;  %v570_v54 = vmul.f32 %v1462_v39, %v1482_v47  ;;  %v1500_v60 = vld [vmem:[%s1467_s4 + $0x48] sm:$0xff]  ;;  %v1503_v61 = vmul.f32 %v1452_v36, %v372_v46  ;;  %v545_v62 = vmul.f32 %v1472_v43, %v372_v46  ;;  %v623_v0 = vmul.f32 %v1475_v44, %v1482_v47  ;;  %v1531_v18 = vld [vmem:[%s1467_s4 + $0x50] sm:$0xff]  ;;  %s1174_s7 = scalar_lea.hbm (%p361_p1), %s1173_s11, 256  ;;  %p1179_p12 = scmp.lt.s32.totalorder (%p361_p1), %s1173_s11, %s1854_s3 }
  0x79   : >> { %v399_v53 = vmul.f32 %v1452_v36, %v376_v48  ;;  %v408_v56 = vadd.f32 %v1465_v40, %v393_v49  ;;  %v438_v57 = vrot.slane %v421_v50, 1  ;;  %v500_v58 = vrot.slane %v475_v51, 2  ;;  %v371_v26 = vld [vmem:[%s1467_s4 + $0x18] sm:$0xff]  ;;  %p1175_p4 = scmp.ne.s32.totalorder (%p361_p1), %s1173_s11, %s1174_s7  ;;  %p1180_p13 = scmp.lt.s32.totalorder (%p361_p1), %s1178_s15, %s1174_s7 }
  0x7a   : >> { %v1507_v63 = vmul.f32 %v1472_v43, %v376_v48  ;;  %v717_v6 = vmul.f32 %v1489_v52, %v1500_v60  ;;  %v586_v8 = vrot.slane %v570_v54, 1  ;;  %v692_v9 = vmul.f32 %v1478_v45, %v376_v48  ;;  %v375_v35 = vld [vmem:[%s1467_s4 + $0x38] sm:$0xff] }
  0x7b   : >> { %v1512_v4 = vadd.f32 %v1465_v40, %v399_v53  ;;  %v462_v5 = vadd.f32 %v438_v57, %v408_v56  ;;  %v422_v11 = vmul.f32 %v1455_v37, %v370_v59  ;;  %v476_v12 = vmul.f32 %v1458_v38, %v370_v59  ;;  %v379_v46 = vld [vmem:[%s1467_s4 + $0x58] sm:$0xff]  ;;  %p1176_p8 = pnand (%p361_p1), %p1175_p4, %p1362_p5  ;;  %p1181_p0 = por (%p361_p1), %p1180_p13, %p1179_p12 }
  0x7c   : >> { %v770_v14 = vmul.f32 %v1495_v55, %v1500_v60  ;;  %v409_v15 = vadd.f32 %v1465_v40, %v394_v7  ;;  %v1528_v16 = vmul.f32 %v1462_v39, %v1519_v10  ;;  %v647_v17 = vrot.slane %v623_v0, 2 }
  0x7d   : >> { %v532_v13 = vadd.f32 %v500_v58, %v462_v5  ;;  %v439_v19 = vrot.slane %v422_v11, 1  ;;  %v501_v20 = vrot.slane %v476_v12, 2  ;;  %v624_v21 = vmul.f32 %v1475_v44, %v1519_v10  ;;  %p1177_p10 = pneg (%p361_p1), %p1176_p8 }
  0x7e   : >> { %v733_v23 = vrot.slane %v717_v6, 1  ;;  %v1537_v24 = vmul.f32 %v1489_v52, %v1531_v18  ;;  %v1541_v25 = vmul.f32 %v1495_v55, %v1531_v18  ;;  %v587_v29 = vrot.slane %v1528_v16, 1 }
  0x7f   : >> { %v557_v22 = vadd.f32 %v545_v62, %v532_v13  ;;  %v440_v27 = vsel %vm437_vm0, %v438_v57, %v439_v19  ;;  %v502_v28 = vsel %vm499_vm1, %v500_v58, %v501_v20  ;;  %v395_v30 = vmul.f32 %v1452_v36, %v370_v59  ;;  %p1182_p3 = pnand (%p361_p1), %p1181_p0, %p1177_p10 }
  0x80   : >> { %v794_v32 = vrot.slane %v770_v14, 2  ;;  %v463_v33 = vadd.f32 %v440_v27, %v409_v15  ;;  %v546_v34 = vmul.f32 %v1472_v43, %v1482_v47  ;;  %v648_v41 = vrot.slane %v624_v21, 2 }
  0x81   : >> { %v610_v31 = vadd.f32 %v586_v8, %v557_v22  ;;  %v734_v42 = vrot.slane %v1537_v24, 1  ;;  %v410_v48 = vadd.f32 %v1465_v40, %v395_v30  ;;  %v477_v49 = vmul.f32 %v1458_v38, %v371_v26 }
  0x82   : >> { %v533_v51 = vadd.f32 %v502_v28, %v463_v33  ;;  %v693_v53 = vmul.f32 %v1478_v45, %v1500_v60  ;;  %v795_v54 = vrot.slane %v1541_v25, 2  ;;  %v588_v56 = vsel %vm437_vm0, %v586_v8, %v587_v29  ;;  %v380_v28 = vld [vmem:[%s1467_s4 + $0x60] sm:$0xff] }
  0x83   : >> { %v679_v50 = vadd.f32 %v647_v17, %v610_v31  ;;  %v464_v57 = vadd.f32 %v439_v19, %v410_v48  ;;  %v1560_v58 = vmul.f32 %v1458_v38, %v375_v35  ;;  %v503_v59 = vrot.slane %v477_v49, 2 }
  0x84   : >> { %v558_v0 = vadd.f32 %v546_v34, %v533_v51  ;;  %v1564_v5 = vmul.f32 %v1458_v38, %v379_v46  ;;  %v547_v6 = vmul.f32 %v1472_v43, %v1519_v10  ;;  %v649_v7 = vsel %vm499_vm1, %v647_v17, %v648_v41  ;;  %v1601_v51 = vld [vmem:[%s1467_s4 + $0x68] sm:$0xff] }
  0x85   : >> { %v704_v62 = vadd.f32 %v692_v9, %v679_v50  ;;  %v735_v8 = vsel %vm437_vm0, %v733_v23, %v734_v42  ;;  %v504_v11 = vsel %vm499_vm1, %v501_v20, %v503_v59  ;;  %v625_v12 = vmul.f32 %v1475_v44, %v375_v35 }
  0x86   : >> { %v611_v13 = vadd.f32 %v588_v56, %v558_v0  ;;  %v796_v14 = vsel %vm499_vm1, %v794_v32, %v795_v54  ;;  %v534_v15 = vadd.f32 %v504_v11, %v464_v57  ;;  %v508_v16 = vrot.slane %v1560_v58, 2 }
  0x87   : >> { %v757_v9 = vadd.f32 %v733_v23, %v704_v62  ;;  %v1580_v17 = vmul.f32 %v1475_v44, %v379_v46  ;;  %v650_v19 = vrot.slane %v625_v12, 2  ;;  %v772_v21 = vmul.f32 %v1495_v55, %v379_v46 }
  0x88   : >> { %v680_v22 = vadd.f32 %v649_v7, %v611_v13  ;;  %v513_v25 = vrot.slane %v1564_v5, 2  ;;  %v559_v23 = vadd.f32 %v547_v6, %v534_v15  ;;  %v411_v30 = vadd.f32 %v1465_v40, %v1503_v61 }
  0x89   : >> { %v826_v20 = vadd.f32 %v794_v32, %v757_v9  ;;  %v651_v26 = vsel %vm499_vm1, %v648_v41, %v650_v19  ;;  %v797_v27 = vrot.slane %v772_v21, 2  ;;  %v423_v31 = vmul.f32 %v1455_v37, %v1482_v47  ;;  %v1622_v21 = vld [vmem:[%s1467_s4 + $0x70] sm:$0xff] }
  0x8a   : >> { %v705_v33 = vadd.f32 %v693_v53, %v680_v22  ;;  %v612_v34 = vadd.f32 %v587_v29, %v559_v23  ;;  %v694_v32 = vmul.f32 %v1478_v45, %v1531_v18  ;;  %v478_v35 = vmul.f32 %v1458_v38, %v1482_v47 }
  0x8b   : >> { %840 = vst [vmem:[%s1576_s19 - $0x7] sm:$0x80] %v826_v20  ;;  %v655_v41 = vrot.slane %v1580_v17, 2  ;;  %v441_v46 = vrot.slane %v423_v31, 1  ;;  %v572_v48 = vmul.f32 %v1462_v39, %v1500_v60  ;;  %v626_v61 = vmul.f32 %v1475_v44, %v1500_v60 }
  0x8c   : >> { %v758_v49 = vadd.f32 %v735_v8, %v705_v33  ;;  %v681_v50 = vadd.f32 %v651_v26, %v612_v34  ;;  %v402_v29 = vmul.f32 %v1452_v36, %v380_v28  ;;  %v505_v53 = vrot.slane %v478_v35, 2 }
  0x8d   : >> { %v798_v56 = vsel %vm499_vm1, %v795_v54, %v797_v27  ;;  %v465_v57 = vadd.f32 %v441_v46, %v411_v30  ;;  %v695_v59 = vmul.f32 %v1478_v45, %v380_v28  ;;  %v719_v62 = vmul.f32 %v1489_v52, %v1601_v51  ;;  %v383_v30 = vld [vmem:[%s1467_s4 + $0x78] sm:$0xff] }
  0x8e   : >> { %v827_v0 = vadd.f32 %v796_v14, %v758_v49  ;;  %v706_v6 = vadd.f32 %v694_v32, %v681_v50  ;;  %v589_v7 = vrot.slane %v572_v48, 1  ;;  %v397_v8 = vmul.f32 %v1452_v36, %v1482_v47 }
  0x8f   : >> { %v535_v11 = vadd.f32 %v505_v53, %v465_v57  ;;  %v652_v12 = vrot.slane %v626_v61, 2  ;;  %v424_v9 = vmul.f32 %v1455_v37, %v1519_v10  ;;  %v479_v54 = vmul.f32 %v1458_v38, %v1519_v10 }
  0x90   : >> { %841 = vst [vmem:[%s1576_s19 + $0x1] sm:$0xff] %v827_v0  ;;  %v759_v13 = vadd.f32 %v734_v42, %v706_v6  ;;  %v736_v15 = vrot.slane %v719_v62, 1  ;;  %v773_v14 = vmul.f32 %v1495_v55, %v1601_v51  ;;  %v412_v47 = vadd.f32 %v1465_v40, %v397_v8 }
  0x91   : >> { %v560_v19 = vadd.f32 %v1507_v63, %v535_v11  ;;  %v442_v20 = vrot.slane %v424_v9, 1  ;;  %v506_v22 = vrot.slane %v479_v54, 2  ;;  %v573_v23 = vmul.f32 %v1462_v39, %v1531_v18 }
  0x92   : >> { %v828_v26 = vadd.f32 %v798_v56, %v759_v13  ;;  %v549_v24 = vmul.f32 %v1472_v43, %v1500_v60  ;;  %v627_v42 = vmul.f32 %v1475_v44, %v1531_v18  ;;  %v1632_v27 = vmul.f32 %v1489_v52, %v1622_v21 }
  0x93   : >> { %v613_v63 = vadd.f32 %v589_v7, %v560_v19  ;;  %v443_v31 = vsel %vm437_vm0, %v441_v46, %v442_v20  ;;  %v507_v33 = vsel %vm499_vm1, %v505_v53, %v506_v22  ;;  %v590_v34 = vrot.slane %v573_v23, 1 }
  0x94   : >> { %842 = vst [vmem:[%s1576_s19 + $0x9] sm:$0x7f] %v828_v26  ;;  %v466_v32 = vadd.f32 %v443_v31, %v412_v47  ;;  %v653_v35 = vrot.slane %v627_v42, 2  ;;  %v737_v48 = vrot.slane %v1632_v27, 1  ;;  %v774_v61 = vmul.f32 %v1495_v55, %v1622_v21 }
  0x95   : >> { %v1642_v49 = vadd.f32 %v1465_v40, %v402_v29  ;;  %v682_v50 = vadd.f32 %v652_v12, %v613_v63  ;;  %v398_v56 = vmul.f32 %v1452_v36, %v1519_v10  ;;  %v1647_v46 = vmul.f32 %v1458_v38, %v383_v30 }
  0x96   : >> { %v551_v53 = vmul.f32 %v1472_v43, %v380_v28  ;;  %v799_v57 = vrot.slane %v773_v14, 2  ;;  %v536_v62 = vadd.f32 %v507_v33, %v466_v32  ;;  %v800_v0 = vrot.slane %v774_v61, 2  ;;  %v384_v33 = vld [vmem:[%s1467_s4 + $0x80] sm:$0xff] }
  0x97   : >> { %v707_v6 = vadd.f32 %v695_v59, %v682_v50  ;;  %v591_v8 = vsel %vm437_vm0, %v589_v7, %v590_v34  ;;  %v696_v11 = vmul.f32 %v1478_v45, %v1601_v51  ;;  %v413_v29 = vadd.f32 %v1465_v40, %v398_v56  ;;  %v1685_v56 = vld [vmem:[%s1467_s4 + $0x88] sm:$0xff] }
  0x98   : >> { %v561_v9 = vadd.f32 %v549_v24, %v536_v62  ;;  %v654_v54 = vsel %vm499_vm1, %v652_v12, %v653_v35  ;;  %v738_v10 = vsel %vm437_vm0, %v736_v15, %v737_v48  ;;  %v509_v28 = vsel %vm499_vm1, %v506_v22, %v508_v16 }
  0x99   : >> { %v760_v13 = vadd.f32 %v736_v15, %v707_v6  ;;  %v467_v59 = vadd.f32 %v442_v20, %v413_v29  ;;  %v518_v7 = vrot.slane %v1647_v46, 2  ;;  %v550_v14 = vmul.f32 %v1472_v43, %v1531_v18 }
  0x9a   : >> { %v614_v47 = vadd.f32 %v591_v8, %v561_v9  ;;  %v801_v12 = vsel %vm499_vm1, %v799_v57, %v800_v0  ;;  %v775_v19 = vmul.f32 %v1495_v55, %v383_v30  ;;  %v425_v23 = vmul.f32 %v1455_v37, %v1500_v60 }
  0x9b   : >> { %v829_v58 = vadd.f32 %v799_v57, %v760_v13  ;;  %v537_v16 = vadd.f32 %v509_v28, %v467_v59  ;;  %v1669_v15 = vmul.f32 %v1475_v44, %v383_v30  ;;  %v481_v20 = vmul.f32 %v1458_v38, %v1500_v60 }
  0x9c   : >> { %v683_v22 = vadd.f32 %v654_v54, %v614_v47  ;;  %v802_v26 = vrot.slane %v775_v19, 2  ;;  %v444_v24 = vrot.slane %v425_v23, 1  ;;  %v574_v42 = vmul.f32 %v1462_v39, %v1601_v51 }
  0x9d   : >> { %843 = vst [vmem:[%s1576_s19 + $0x9] sm:$0x80] %v829_v58  ;;  %v562_v63 = vadd.f32 %v550_v14, %v537_v16  ;;  %v656_v31 = vsel %vm499_vm1, %v653_v35, %v655_v41  ;;  %v510_v32 = vrot.slane %v481_v20, 2  ;;  %v629_v30 = vmul.f32 %v1475_v44, %v1601_v51  ;;  %v1712_v20 = vld [vmem:[%s1467_s4 + $0x90] sm:$0xff] }
  0x9e   : >> { %v708_v61 = vadd.f32 %v696_v11, %v683_v22  ;;  %v697_v50 = vmul.f32 %v1478_v45, %v1622_v21  ;;  %v468_v57 = vadd.f32 %v444_v24, %v1512_v4  ;;  %v698_v62 = vmul.f32 %v1478_v45, %v384_v33 }
  0x9f   : >> { %v615_v6 = vadd.f32 %v590_v34, %v562_v63  ;;  %v803_v17 = vsel %vm499_vm1, %v800_v0, %v802_v26  ;;  %v592_v8 = vrot.slane %v574_v42, 1  ;;  %v721_v41 = vmul.f32 %v1489_v52, %v1685_v56 }
  0xa0   : >> { %v761_v35 = vadd.f32 %v738_v10, %v708_v61  ;;  %v538_v29 = vadd.f32 %v510_v32, %v468_v57  ;;  %v400_v11 = vmul.f32 %v1452_v36, %v1500_v60  ;;  %v426_v9 = vmul.f32 %v1455_v37, %v1531_v18 }
  0xa1   : >> { %v684_v54 = vadd.f32 %v656_v31, %v615_v6  ;;  %v657_v4 = vrot.slane %v629_v30, 2  ;;  %v776_v34 = vmul.f32 %v1495_v55, %v1685_v56  ;;  %v482_v0 = vmul.f32 %v1458_v38, %v1531_v18 }
  0xa2   : >> { %v830_v28 = vadd.f32 %v801_v12, %v761_v35  ;;  %v563_v13 = vadd.f32 %v551_v53, %v538_v29  ;;  %v415_v10 = vadd.f32 %v1465_v40, %v400_v11  ;;  %v445_v59 = vrot.slane %v426_v9, 1 }
  0xa3   : >> { %v709_v14 = vadd.f32 %v697_v50, %v684_v54  ;;  %v739_v47 = vrot.slane %v721_v41, 1  ;;  %v511_v60 = vrot.slane %v482_v0, 2  ;;  %v575_v19 = vmul.f32 %v1462_v39, %v1622_v21 }
  0xa4   : >> { %844 = vst [vmem:[%s1576_s19 + $0x11] sm:$0xff] %v830_v28  ;;  %v616_v23 = vadd.f32 %v592_v8, %v563_v13  ;;  %v446_v58 = vsel %vm437_vm0, %v444_v24, %v445_v59  ;;  %v552_v16 = vmul.f32 %v1472_v43, %v1601_v51  ;;  %v630_v12 = vmul.f32 %v1475_v44, %v1622_v21 }
  0xa5   : >> { %v762_v53 = vadd.f32 %v737_v48, %v709_v14  ;;  %v469_v22 = vadd.f32 %v446_v58, %v415_v10  ;;  %v512_v26 = vsel %vm499_vm1, %v510_v32, %v511_v60  ;;  %v593_v42 = vrot.slane %v575_v19, 1  ;;  %v388_v14 = vld [vmem:[%s1467_s4 + $0xa0] sm:$0xff]  ;;  %v389_v58 = vld [vmem:[%s1467_s4 + $0xa8] sm:$0xff] }
  0xa6   : >> { %v685_v63 = vadd.f32 %v657_v4, %v616_v23  ;;  %v658_v31 = vrot.slane %v630_v12, 2  ;;  %v1717_v24 = vmul.f32 %v1489_v52, %v1712_v20  ;;  %v777_v30 = vmul.f32 %v1495_v55, %v1712_v20 }
  0xa7   : >> { %v831_v61 = vadd.f32 %v803_v17, %v762_v53  ;;  %v804_v50 = vrot.slane %v776_v34, 2  ;;  %v539_v27 = vadd.f32 %v512_v26, %v469_v22  ;;  %v401_v48 = vmul.f32 %v1452_v36, %v1531_v18 }
  0xa8   : >> { %v710_v57 = vadd.f32 %v698_v62, %v685_v63  ;;  %v594_v32 = vsel %vm437_vm0, %v592_v8, %v593_v42  ;;  %v740_v6 = vrot.slane %v1717_v24, 1  ;;  %v805_v41 = vrot.slane %v777_v30, 2 }
  0xa9   : >> { %v660_v35 = vrot.slane %v1669_v15, 2  ;;  %845 = vst [vmem:[%s1576_s19 + $0x19] sm:$0x7f] %v831_v61  ;;  %v554_v29 = vmul.f32 %v1472_v43, %v384_v33  ;;  %v564_v11 = vadd.f32 %v552_v16, %v539_v27  ;;  %v416_v17 = vadd.f32 %v1465_v40, %v401_v48  ;;  %v387_v33 = vld [vmem:[%s1467_s4 + $0x98] sm:$0xff] }
  0xaa   : >> { %v763_v9 = vadd.f32 %v739_v47, %v710_v57  ;;  %v659_v54 = vsel %vm499_vm1, %v657_v4, %v658_v31  ;;  %v699_v18 = vmul.f32 %v1478_v45, %v1685_v56  ;;  %v514_v62 = vsel %vm499_vm1, %v511_v60, %v513_v25 }
  0xab   : >> { %v617_v8 = vadd.f32 %v594_v32, %v564_v11  ;;  %v741_v15 = vsel %vm437_vm0, %v739_v47, %v740_v6  ;;  %v470_v34 = vadd.f32 %v445_v59, %v416_v17  ;;  %v553_v0 = vmul.f32 %v1472_v43, %v1622_v21 }
  0xac   : >> { %v832_v4 = vadd.f32 %v804_v50, %v763_v9  ;;  %v806_v28 = vsel %vm499_vm1, %v804_v50, %v805_v41  ;;  %v778_v13 = vmul.f32 %v1495_v55, %v387_v33  ;;  %v427_v5 = vmul.f32 %v1455_v37, %v1601_v51 }
  0xad   : >> { %v686_v25 = vadd.f32 %v659_v54, %v617_v8  ;;  %v540_v10 = vadd.f32 %v514_v62, %v470_v34  ;;  %v484_v47 = vmul.f32 %v1458_v38, %v1601_v51  ;;  %v576_v59 = vmul.f32 %v1462_v39, %v1685_v56 }
  0xae   : >> { %846 = vst [vmem:[%s1576_s19 + $0x19] sm:$0x80] %v832_v4  ;;  %v1752_v60 = vmul.f32 %v1475_v44, %v387_v33  ;;  %v661_v19 = vsel %vm499_vm1, %v658_v31, %v660_v35  ;;  %v807_v23 = vrot.slane %v778_v13, 2  ;;  %v447_v16 = vrot.slane %v427_v5, 1 }
  0xaf   : >> { %v711_v12 = vadd.f32 %v699_v18, %v686_v25  ;;  %v565_v53 = vadd.f32 %v553_v0, %v540_v10  ;;  %v515_v22 = vrot.slane %v484_v47, 2  ;;  %v632_v26 = vmul.f32 %v1475_v44, %v1685_v56  ;;  %v390_v18 = vld [vmem:[%s1467_s4 + $0xb0] sm:$0xff] }
  0xb0   : >> { %v700_v63 = vmul.f32 %v1478_v45, %v1712_v20  ;;  %v471_v30 = vadd.f32 %v447_v16, %v1642_v49  ;;  %v595_v61 = vrot.slane %v576_v59, 1  ;;  %v701_v50 = vmul.f32 %v1478_v45, %v388_v14 }
  0xb1   : >> { %v764_v27 = vadd.f32 %v741_v15, %v711_v12  ;;  %v618_v31 = vadd.f32 %v593_v42, %v565_v53  ;;  %v723_v48 = vmul.f32 %v1489_v52, %v389_v58  ;;  %v403_v57 = vmul.f32 %v1452_v36, %v1601_v51  ;;  %v391_v53 = vld [vmem:[%s1467_s4 + $0xb8] sm:$0xff] }
  0xb2   : >> { %v808_v32 = vsel %vm499_vm1, %v805_v41, %v807_v23  ;;  %v541_v35 = vadd.f32 %v515_v22, %v471_v30  ;;  %v428_v11 = vmul.f32 %v1455_v37, %v1622_v21  ;;  %v485_v49 = vmul.f32 %v1458_v38, %v1622_v21 }
  0xb3   : >> { %v833_v17 = vadd.f32 %v806_v28, %v764_v27  ;;  %v687_v9 = vadd.f32 %v661_v19, %v618_v31  ;;  %v662_v54 = vrot.slane %v632_v26, 2  ;;  %v418_v42 = vadd.f32 %v1465_v40, %v403_v57 }
  0xb4   : >> { %v566_v62 = vadd.f32 %v554_v29, %v541_v35  ;;  %v779_v8 = vmul.f32 %v1495_v55, %v389_v58  ;;  %v448_v15 = vrot.slane %v428_v11, 1  ;;  %v516_v51 = vrot.slane %v485_v49, 2 }
  0xb5   : >> { %847 = vst [vmem:[%s1576_s19 + $0x21] sm:$0xff] %v833_v17  ;;  %v712_v41 = vadd.f32 %v700_v63, %v687_v9  ;;  %v742_v33 = vrot.slane %v723_v48, 1  ;;  %v577_v37 = vmul.f32 %v1462_v39, %v1712_v20  ;;  %v633_v38 = vmul.f32 %v1475_v44, %v1712_v20 }
  0xb6   : >> { %v619_v34 = vadd.f32 %v595_v61, %v566_v62  ;;  %v449_v0 = vsel %vm437_vm0, %v447_v16, %v448_v15  ;;  %v517_v4 = vsel %vm499_vm1, %v515_v22, %v516_v51  ;;  %v724_v29 = vmul.f32 %v1489_v52, %v390_v18 }
  0xb7   : >> { %v765_v28 = vadd.f32 %v740_v6, %v712_v41  ;;  %v472_v13 = vadd.f32 %v449_v0, %v418_v42  ;;  %v555_v5 = vmul.f32 %v1472_v43, %v1685_v56  ;;  %v596_v25 = vrot.slane %v577_v37, 1 }
  0xb8   : >> { %v688_v39 = vadd.f32 %v662_v54, %v619_v34  ;;  %v663_v10 = vrot.slane %v633_v38, 2  ;;  %v743_v44 = vrot.slane %v724_v29, 1  ;;  %v404_v14 = vmul.f32 %v1452_v36, %v1622_v21 }
  0xb9   : >> { %v834_v47 = vadd.f32 %v808_v32, %v765_v28  ;;  %v809_v59 = vrot.slane %v779_v8, 2  ;;  %v542_v19 = vadd.f32 %v517_v4, %v472_v13  ;;  %v780_v52 = vmul.f32 %v1495_v55, %v390_v18 }
  0xba   : >> { %v713_v24 = vadd.f32 %v701_v50, %v688_v39  ;;  %v597_v6 = vsel %vm437_vm0, %v595_v61, %v596_v25  ;;  %v744_v23 = vsel %vm437_vm0, %v742_v33, %v743_v44  ;;  %v419_v56 = vadd.f32 %v1465_v40, %v404_v14 }
  0xbb   : >> { %848 = vst [vmem:[%s1576_s19 + $0x29] sm:$0x7f] %v834_v47  ;;  %v567_v16 = vadd.f32 %v555_v5, %v542_v19  ;;  %v519_v12 = vsel %vm499_vm1, %v516_v51, %v518_v7  ;;  %v664_v21 = vsel %vm499_vm1, %v662_v54, %v663_v10  ;;  %v556_v26 = vmul.f32 %v1472_v43, %v1712_v20 }
  0xbc   : >> { %v766_v36 = vadd.f32 %v742_v33, %v713_v24  ;;  %v473_v22 = vadd.f32 %v448_v15, %v419_v56  ;;  %v665_v63 = vrot.slane %v1752_v60, 2  ;;  %v702_v40 = vmul.f32 %v1478_v45, %v389_v58 }
  0xbd   : >> { %v620_v30 = vadd.f32 %v597_v6, %v567_v16  ;;  %v810_v50 = vrot.slane %v780_v52, 2  ;;  %v781_v7 = vmul.f32 %v1495_v55, %v391_v53  ;;  %v703_v60 = vmul.f32 %v1478_v45, %v390_v18 }
  0xbe   : >> { %v835_v61 = vadd.f32 %v809_v59, %v766_v36  ;;  %v543_v27 = vadd.f32 %v519_v12, %v473_v22  ;;  %v666_v57 = vsel %vm499_vm1, %v663_v10, %v665_v63 }
  0xbf   : >> { %v689_v46 = vadd.f32 %v664_v21, %v620_v30  ;;  %v811_v43 = vsel %vm499_vm1, %v809_v59, %v810_v50  ;;  %v812_v58 = vrot.slane %v781_v7, 2 }
  0xc0   : >> { %849 = vst [vmem:[%s1576_s19 + $0x29] sm:$0x80] %v835_v61  ;;  %v568_v31 = vadd.f32 %v556_v26, %v543_v27 }
  0xc1   : >> { %v714_v48 = vadd.f32 %v702_v40, %v689_v46  ;;  %v813_v17 = vsel %vm499_vm1, %v810_v50, %v812_v58 }
  0xc2   : >> { %v621_v20 = vadd.f32 %v596_v25, %v568_v31 }
  0xc3   : >> { %v767_v32 = vadd.f32 %v744_v23, %v714_v48 }
  0xc4   : >> { %v690_v35 = vadd.f32 %v666_v57, %v621_v20 }
  0xc5   : >> { %v836_v11 = vadd.f32 %v811_v43, %v767_v32 }
  0xc6   : >> { %v715_v49 = vadd.f32 %v703_v60, %v690_v35 }
  0xc7   : >> { %850 = vst [vmem:[%s1576_s19 + $0x31] sm:$0xff] %v836_v11 }
  0xc8   : >> { %v768_v55 = vadd.f32 %v743_v44, %v715_v49  ;;  %363 = sbr.rel (!%p361_p1) target bundleno = 112 (0x70), region = 96 }
  0xca   : >> { %v837_v9 = vadd.f32 %v813_v17, %v768_v55 }
  0xcc   : >> { %851 = vst [vmem:[%s1576_s19 + $0x39] sm:$0x7f] %v837_v9 }
  0xcd   : > { %1185 = shalt.err (!%p1182_p3)
}
  0xce   : > { %s1258_s6 = smov 128   ;;  %s1259_s20 = smov 8  }
  0xcf   : > { %1018 = dma.vmem_to_hbm [thread:$0]  (%p1362_p5), %s867_s29, 4096, %s869_s21, %s853_s9, %s1258_s6, %s1258_s6, %s1259_s20  }
  0xd0 PF: > { %s883_s4 = sand.u32 1, %s1228_s12   ;;  %p1029_p7 = pnand %p992_p11, %p1329_p6 }
  0xd1   : > { %s884_s10 = scalar_lea.sflag [#allocation5], %s883_s4 }
  0xd2   : > { %p1030_p9 = pneg %p1029_p7 }
  0xd4   : > { %1223 = dma.done.wait (%p1030_p9), %s884_s10, 4096  }
  0xd5   : > { %1225 = vsyncadd (%p1030_p9), %s884_s10, 4294963200  ;;  %s20_s17 = sadd.s32 1, %s1248_s17   ;;  %s1866_s12 = smov %s1232_s13 }
  0xd6   : > { %p17_p2 = scmp.ge.s32.totalorder %s20_s17, 4   ;;  %s1867_s13 = smov %s1236_s14 }
  0xd7   : > { %s1868_s14 = smov %s1371_s18  ;;  %s1869_s15 = smov %s1244_s16 }
  0xd8   : > { %s1870_s16 = smov %s1872_s5  ;;  %19 = sbr.rel (!%p17_p2) target bundleno = 9 (0x9), region = 107 }
  0xdd   :  { %890 = vsyncpa [#allocation4], 1 }
  0xde   :  { %892 = vsyncpa [#allocation4 + $0x1], 1 }
  0xdf   :  { %893 = vsyncpa [#allocation7], 1 }
  0xe0   :  { %894 = vsyncpa [#allocation5], 1 }
  0xe1   :  { %896 = vsyncpa [#allocation5 + $0x1], 1 }

</bundles_post_ra>
